<compile_context>
chip_gen: v7x
topology: tpu7x:2x2x1
jax: 0.10.0
libtpu: 0.0.40
codegen_flags: <defaults>
</compile_context>

<pallas_src>
import functools

import jax
import jax.numpy as jnp
from jax.experimental import pallas as pl
from jax.experimental.pallas import tpu as pltpu


def block_kernel(x_ref, w1_ref, b1_ref, w2_ref, b2_ref, o_ref):
    """One (lane-packed) batch tile of the Deep Ritz block, fully in VMEM.

    x_ref : (tile, Lin)   f32 packed activations (Lin = pack * in_N, lane-dense)
    w1_ref: (Lin, Lh)     block-diagonal W1^T, already in the MXU dtype
    b1_ref: (1, Lh)       f32, pack-tiled bias
    w2_ref: (Lh, Lin)     block-diagonal W2^T, MXU dtype
    b2_ref: (1, Lin)      f32, pack-tiled bias
    o_ref : (tile, Lin)   (out_N == in_N, so the packed residual lines up)
    """
    x = x_ref[...]                         # f32 copy kept for the residual
    mxu_dtype = w1_ref.dtype

    # L1 + tanh: MXU matmul with f32 accumulation; bias/tanh in f32 (EUP).
    h = jnp.dot(x.astype(mxu_dtype), w1_ref[...],
                preferred_element_type=jnp.float32) + b1_ref[...]
    h = jnp.tanh(h)

    # L2 + tanh.
    y = jnp.dot(h.astype(mxu_dtype), w2_ref[...],
                preferred_element_type=jnp.float32) + b2_ref[...]
    y = jnp.tanh(y)

    # Residual add in f32; single lane-dense (unmasked) store of the tile.
    o_ref[...] = (y + x).astype(o_ref.dtype)


def _block_diag(w, pack):
    """(k, n) -> (pack*k, pack*n) with `pack` copies of w on the diagonal."""
    if pack == 1:
        return w
    k, n = w.shape
    eye = jnp.eye(pack, dtype=w.dtype)
    return (eye[:, None, :, None] * w[None, :, None, :]).reshape(pack * k, pack * n)


def _choose_tiling(n_rows, tile_max, min_tile, target_grid):
    """Pick (tile, grid) along the packed batch axis (static Python ints).

    Big tiles amortize the ~0.35 us/step overhead and make each DMA large, but
    keep >= target_grid steps when the batch allows so (a) v7x's two
    TensorCores each get several steps and (b) the BlockSpec pipeline overlaps
    x-load / out-store DMAs with compute.  `tile` is a multiple of 8 (f32
    sublane) unless a single block covers the whole (possibly ragged) batch.
    """
    if n_rows <= min_tile:
        return n_rows, 1                       # single block == full extent
    n_tiles = max(target_grid, pl.cdiv(n_rows, tile_max))
    tile = pl.cdiv(n_rows, n_tiles)
    tile = max(min_tile, ((tile + 7) // 8) * 8)
    tile = min(tile, tile_max)
    return tile, pl.cdiv(n_rows, tile)


@functools.partial(
    jax.jit,
    static_argnames=("mxu_dtype", "tile_rows_max", "min_tile_rows", "target_grid"),
)
def deep_ritz_block(x, w1_t, b1, w2_t, b2, *, mxu_dtype=jnp.bfloat16,
                    tile_rows_max=8192, min_tile_rows=1024, target_grid=8):
    """y = tanh(tanh(x @ w1_t + b1) @ w2_t + b2) + x.

    x: (B, in_N) f32; w1_t: (in_N, width); w2_t: (width, out_N); out_N == in_N.
    Matmul operands run in `mxu_dtype` (bf16 default; f32 accumulate, bias,
    tanh and residual).  Pass mxu_dtype=jnp.float32 for exact f32 semantics.
    """
    B, in_N = x.shape
    width = w1_t.shape[1]
    out_N = w2_t.shape[1]
    assert in_N == out_N, "residual connection requires in_N == out_N"

    # ---- lane packing ------------------------------------------------------
    # Pack `pack` consecutive batch rows into one 128-lane-dense row (free,
    # contiguous reshape) and expand the weights block-diagonally so the math
    # is unchanged.  Falls back to pack=1 when in_N doesn't divide 128.
    pack = 128 // in_N if (in_N < 128 and 128 % in_N == 0) else 1

    # Pad only the < pack-row remainder (common case B % pack == 0: no copy).
    B_pad = pl.cdiv(B, pack) * pack
    x_in = x if B_pad == B else jnp.pad(x, ((0, B_pad - B), (0, 0)))
    n_rows = B_pad // pack
    lanes_in = pack * in_N
    lanes_h = pack * width
    xp = x_in.reshape(n_rows, lanes_in)          # pure row-major view

    # Block-diagonal weights, cast to the MXU dtype ONCE (not per grid step);
    # biases stay f32 (added after the f32 accumulation).
    w1_bd = _block_diag(w1_t, pack).astype(mxu_dtype)
    w2_bd = _block_diag(w2_t, pack).astype(mxu_dtype)
    b1_p = jnp.tile(b1.astype(jnp.float32), pack).reshape(1, lanes_h)
    b2_p = jnp.tile(b2.astype(jnp.float32), pack).reshape(1, lanes_in)

    # ---- batch tiling (no full-batch pad; boundary block is masked) --------
    tile, grid = _choose_tiling(
        n_rows,
        tile_max=max(8, tile_rows_max // pack),
        min_tile=max(8, min_tile_rows // pack),
        target_grid=target_grid,
    )

    out_p = pl.pallas_call(
        block_kernel,
        out_shape=jax.ShapeDtypeStruct((n_rows, lanes_in), x.dtype),
        grid_spec=pl.GridSpec(
            grid=(grid,),
            in_specs=[
                pl.BlockSpec((tile, lanes_in), lambda i: (i, 0)),     # x (pipelined)
                pl.BlockSpec((lanes_in, lanes_h), lambda i: (0, 0)),  # W1 blkdiag (resident)
                pl.BlockSpec((1, lanes_h), lambda i: (0, 0)),         # b1 (resident)
                pl.BlockSpec((lanes_h, lanes_in), lambda i: (0, 0)),  # W2 blkdiag (resident)
                pl.BlockSpec((1, lanes_in), lambda i: (0, 0)),        # b2 (resident)
            ],
            out_specs=pl.BlockSpec((tile, lanes_in), lambda i: (i, 0)),
        ),
        compiler_params=pltpu.CompilerParams(
            dimension_semantics=("parallel",),   # shard batch steps over v7x's 2 TCs
        ),
    )(xp, w1_bd, b1_p, w2_bd, b2_p)

    out = out_p.reshape(B_pad, out_N)            # pure view back to (rows, out_N)
    return out if B_pad == B else out[:B]


def ref_block(x, w1_t, b1, w2_t, b2):
    h = jnp.tanh(x @ w1_t + b1)
    y = jnp.tanh(h @ w2_t + b2)
    return y + x


if __name__ == "__main__":
    # Shapes consistent with Block(in_N, width, out_N), in_N == out_N.
    in_N, width, out_N = 32, 64, 32

    key = jax.random.PRNGKey(0)
    kx1, kx2, kx3, kw1, kb1, kw2, kb2 = jax.random.split(key, 7)

    # nn.Linear-style init: U(-1/sqrt(fan_in), 1/sqrt(fan_in)); weight is (out, in).
    lim1 = 1.0 / jnp.sqrt(jnp.float32(in_N))
    lim2 = 1.0 / jnp.sqrt(jnp.float32(width))
    W1 = jax.random.uniform(kw1, (width, in_N), jnp.float32, -lim1, lim1)
    b1 = jax.random.uniform(kb1, (width,), jnp.float32, -lim1, lim1)
    W2 = jax.random.uniform(kw2, (out_N, width), jnp.float32, -lim2, lim2)
    b2 = jax.random.uniform(kb2, (out_N,), jnp.float32, -lim2, lim2)
    w1_t, w2_t = W1.T, W2.T

    # (1) f32 MXU path, single-tile batch (B % pack == 0 -> zero-copy packing).
    B = 256
    x = jax.random.normal(kx1, (B, in_N), jnp.float32)
    ref = ref_block(x, w1_t, b1, w2_t, b2)
    out = jax.block_until_ready(
        deep_ritz_block(x, w1_t, b1, w2_t, b2, mxu_dtype=jnp.float32))
    assert out.shape == (B, out_N)
    assert jnp.allclose(out, ref, atol=1e-5, rtol=1e-5), "f32 path mismatch"

    # (2) multi-tile batch with a masked boundary block (no wrapper pad/slice):
    #     3000 rows -> 750 packed rows -> grid of 3 tiles of 256 (last masked).
    B2 = 3000
    x2 = jax.random.normal(kx2, (B2, in_N), jnp.float32)
    out2 = jax.block_until_ready(
        deep_ritz_block(x2, w1_t, b1, w2_t, b2, mxu_dtype=jnp.float32))
    ref2 = ref_block(x2, w1_t, b1, w2_t, b2)
    assert out2.shape == (B2, out_N)
    assert jnp.allclose(out2, ref2, atol=1e-5, rtol=1e-5), "multi-tile mismatch"

    # (3) ragged batch not divisible by the packing factor (tiny remainder pad).
    B3 = 203
    x3 = jax.random.normal(kx3, (B3, in_N), jnp.float32)
    out3 = jax.block_until_ready(
        deep_ritz_block(x3, w1_t, b1, w2_t, b2, mxu_dtype=jnp.float32))
    ref3 = ref_block(x3, w1_t, b1, w2_t, b2)
    assert out3.shape == (B3, out_N)
    assert jnp.allclose(out3, ref3, atol=1e-5, rtol=1e-5), "ragged-batch mismatch"

    # (4) default bf16 MXU operands (f32 accumulate / bias / tanh / residual).
    outb = jax.block_until_ready(deep_ritz_block(x, w1_t, b1, w2_t, b2))
    assert outb.shape == (B, out_N)
    assert jnp.allclose(outb, ref, atol=5e-2, rtol=5e-2), "bf16 MXU path mismatch"

    print("KERNEL_OK")
</pallas_src>

<mosaic_0001>
module attributes {stable_mosaic.version = 11 : i64} {
  func.func @block_kernel(%arg0: i32, %arg1: memref<64x128xf32, #tpu.memory_space<vmem>>, %arg2: memref<128x256xf32, #tpu.memory_space<vmem>>, %arg3: memref<1x256xf32, #tpu.memory_space<vmem>>, %arg4: memref<256x128xf32, #tpu.memory_space<vmem>>, %arg5: memref<1x128xf32, #tpu.memory_space<vmem>>, %arg6: memref<64x128xf32, #tpu.memory_space<vmem>>) attributes {dimension_semantics = [#tpu.dimension_semantics<parallel>], iteration_bounds = array<i64: 1>, scalar_prefetch = 0 : i64, scratch_operands = 0 : i64, tpu.core_type = #tpu.core_type<tc>, window_params = [{transform_indices = @transform_0, window_bounds = array<i64: 64, 128>}, {pipeline_mode = #tpu.pipeline_mode<synchronous>, transform_indices = @transform_1, window_bounds = array<i64: 128, 256>}, {pipeline_mode = #tpu.pipeline_mode<synchronous>, transform_indices = @transform_2, window_bounds = array<i64: 1, 256>}, {pipeline_mode = #tpu.pipeline_mode<synchronous>, transform_indices = @transform_3, window_bounds = array<i64: 256, 128>}, {pipeline_mode = #tpu.pipeline_mode<synchronous>, transform_indices = @transform_4, window_bounds = array<i64: 1, 128>}, {transform_indices = @transform_5, window_bounds = array<i64: 64, 128>}]} {
    %c0 = arith.constant 0 : index
    %c0_0 = arith.constant 0 : index
    %0 = vector.load %arg1[%c0, %c0_0] : memref<64x128xf32, #tpu.memory_space<vmem>>, vector<64x128xf32>
    %c0_1 = arith.constant 0 : index
    %c0_2 = arith.constant 0 : index
    %1 = vector.load %arg2[%c0_1, %c0_2] : memref<128x256xf32, #tpu.memory_space<vmem>>, vector<128x256xf32>
    %cst = arith.constant dense<0.000000e+00> : vector<64x256xf32>
    %2 = tpu.matmul %0, %1, %cst {dimension_numbers = #tpu.dot_dimension_numbers<[1], [0], [0], [1], [0, 0, 1, 1], [], []>} : vector<64x128xf32>, vector<128x256xf32>, vector<64x256xf32> -> vector<64x256xf32>
    %c0_3 = arith.constant 0 : index
    %c0_4 = arith.constant 0 : index
    %3 = vector.load %arg3[%c0_3, %c0_4] : memref<1x256xf32, #tpu.memory_space<vmem>>, vector<1x256xf32>
    %4 = vector.broadcast %3 : vector<1x256xf32> to vector<64x256xf32>
    %5 = arith.addf %2, %4 : vector<64x256xf32>
    %6 = math.tanh %5 : vector<64x256xf32>
    %c0_5 = arith.constant 0 : index
    %c0_6 = arith.constant 0 : index
    %7 = vector.load %arg4[%c0_5, %c0_6] : memref<256x128xf32, #tpu.memory_space<vmem>>, vector<256x128xf32>
    %cst_7 = arith.constant dense<0.000000e+00> : vector<64x128xf32>
    %8 = tpu.matmul %6, %7, %cst_7 {dimension_numbers = #tpu.dot_dimension_numbers<[1], [0], [0], [1], [0, 0, 1, 1], [], []>} : vector<64x256xf32>, vector<256x128xf32>, vector<64x128xf32> -> vector<64x128xf32>
    %c0_8 = arith.constant 0 : index
    %c0_9 = arith.constant 0 : index
    %9 = vector.load %arg5[%c0_8, %c0_9] : memref<1x128xf32, #tpu.memory_space<vmem>>, vector<1x128xf32>
    %10 = vector.broadcast %9 : vector<1x128xf32> to vector<64x128xf32>
    %11 = arith.addf %8, %10 : vector<64x128xf32>
    %12 = math.tanh %11 : vector<64x128xf32>
    %13 = arith.addf %12, %0 : vector<64x128xf32>
    %c0_10 = arith.constant 0 : index
    %c0_11 = arith.constant 0 : index
    %14 = vector.load %arg6[%c0_10, %c0_11] : memref<64x128xf32, #tpu.memory_space<vmem>>, vector<64x128xf32>
    tpu.vector_store %arg6[%c0_10, %c0_11], %13 {strides = array<i32>} : memref<64x128xf32, #tpu.memory_space<vmem>>, vector<64x128xf32>,
    return
  }
  func.func @transform_0(%arg0: i32) -> (i32, i32) {
    %c0_i32 = arith.constant 0 : i32
    %c0_i32_0 = arith.constant 0 : i32
    return %arg0, %c0_i32 : i32, i32
  }
  func.func @transform_1(%arg0: i32) -> (i32, i32) {
    %c0_i32 = arith.constant 0 : i32
    %c0_i32_0 = arith.constant 0 : i32
    %c0_i32_1 = arith.constant 0 : i32
    return %c0_i32, %c0_i32_0 : i32, i32
  }
  func.func @transform_2(%arg0: i32) -> (i32, i32) {
    %c0_i32 = arith.constant 0 : i32
    %c0_i32_0 = arith.constant 0 : i32
    %c0_i32_1 = arith.constant 0 : i32
    return %c0_i32, %c0_i32_0 : i32, i32
  }
  func.func @transform_3(%arg0: i32) -> (i32, i32) {
    %c0_i32 = arith.constant 0 : i32
    %c0_i32_0 = arith.constant 0 : i32
    %c0_i32_1 = arith.constant 0 : i32
    return %c0_i32, %c0_i32_0 : i32, i32
  }
  func.func @transform_4(%arg0: i32) -> (i32, i32) {
    %c0_i32 = arith.constant 0 : i32
    %c0_i32_0 = arith.constant 0 : i32
    %c0_i32_1 = arith.constant 0 : i32
    return %c0_i32, %c0_i32_0 : i32, i32
  }
  func.func @transform_5(%arg0: i32) -> (i32, i32) {
    %c0_i32 = arith.constant 0 : i32
    %c0_i32_0 = arith.constant 0 : i32
    return %arg0, %c0_i32 : i32, i32
  }
}

</mosaic_0001>

<bundles_post_ra>
// kernel: tile.13
= control target key start
LH: loop header
LB: loop body
LE: loop exit
PB: predicated region body
PF: predicated region fallthrough
CT: control target
= control target key end

     0   :  { %s22_s0 = inlined_call_operand.vmem [shape: f32[64], index: 0, kind: input, shape index: {}]   ;;  %s23_s1 = inlined_call_operand.vmem [shape: f32[4,64], index: 1, kind: output, shape index: {}]  }
   0x1   :  { %v4_v0 = vld [vmem:[%s22_s0] ss:$0 sm:$0xff] }
   0x2   :  { %5 = vst [vmem:[%s23_s1] sm:$0xf] %v4_v0 }

// kernel: tile.14
= control target key start
LH: loop header
LB: loop body
LE: loop exit
PB: predicated region body
PF: predicated region fallthrough
CT: control target
= control target key end

     0   :  { %s6_s8 = smov 3  ;;  %vm8_vm0 = vcmask 523264   ;;  %s30_s9 = smov 64   ;;  %vm15_vm1 = vcmask 1048064   ;;  %s50_s0 = inlined_call_operand.vmem [shape: f32[4,64], index: 0, kind: input, shape index: {}]   ;;  %s51_s1 = inlined_call_operand.vmem [shape: f32[1,256], index: 1, kind: output, shape index: {}]  }
   0x1   :  { %v4_v0 = vld [vmem:[%s50_s0] sm:$0xf]  ;;  %s11_s0 = smov 3 }
   0x2   :  { %5 = vst [vmem:[#allocation1] sm:$0xf] %v4_v0 }
   0x9   :  { %v12_v1 = vld [vmem:[#allocation1 + $0x1] ss:$2 sm:%s11_s0]   ;;  %v7_v2 = vld [vmem:[#allocation1] ss:$2 sm:%s6_s8]  }
   0xa   :  { %13 = vrot.lane.b32.xlu0 %v12_v1, %s30_s9  ;;  %9 = vst.msk [vmem:[#allocation0] ss:$8 sm:$0x3] %vm8_vm0, %v7_v2  }
  0x7c   :  { %v14_v3 = vpop.permute.xlu0 %13  }
  0x7d   :  { %16 = vst.msk [vmem:[#allocation0] ss:$8 sm:$0x3] %vm15_vm1, %v14_v3  }
  0x84   :  { %v20_v4 = vld [vmem:[#allocation0] sm:$0x1]  ;;  %v24_v5 = vld [vmem:[#allocation0 + $0x8] sm:$0x1] }
  0x85   :  { %22 = vst [vmem:[%s51_s1] sm:$0x1] %v20_v4  ;;  %28 = vst [vmem:[%s51_s1 + $0x1] sm:$0x1] %v24_v5 }

// kernel: tile.18
= control target key start
LH: loop header
LB: loop body
LE: loop exit
PB: predicated region body
PF: predicated region fallthrough
CT: control target
= control target key end

     0   :  { %s22_s0 = inlined_call_operand.vmem [shape: f32[32], index: 0, kind: input, shape index: {}]   ;;  %s23_s1 = inlined_call_operand.vmem [shape: f32[4,32], index: 1, kind: output, shape index: {}]  }
   0x1   :  { %v4_v0 = vld [vmem:[%s22_s0] ss:$0 sm:$0xff] }
   0x2   :  { %5 = vst [vmem:[%s23_s1] sm:$0xf] %v4_v0 }

// kernel: tile.19
= control target key start
LH: loop header
LB: loop body
LE: loop exit
PB: predicated region body
PF: predicated region fallthrough
CT: control target
= control target key end

     0   :  { %vm7_vm0 = vcmask 261120   ;;  %s37_s8 = smov 32   ;;  %s38_s9 = smov 64   ;;  %vm13_vm1 = vcmask 1048320   ;;  %vm19_vm2 = vcmask 785920   ;;  %vm25_vm3 = vcmask 523520   ;;  %s55_s0 = inlined_call_operand.vmem [shape: f32[4,32], index: 0, kind: input, shape index: {}]   ;;  %s56_s1 = inlined_call_operand.vmem [shape: f32[1,128], index: 1, kind: output, shape index: {}]  }
   0x1   :  { %v4_v0 = vld [vmem:[%s55_s0] sm:$0xf]  ;;  %s36_s0 = smov 96  }
   0x2   :  { %5 = vst [vmem:[#allocation1] sm:$0xf] %v4_v0 }
   0x9   :  { %v10_v1 = vld [vmem:[#allocation1 + $0x3] sm:$0x1]   ;;  %v22_v2 = vld [vmem:[#allocation1 + $0x1] sm:$0x1]   ;;  %v6_v3 = vld [vmem:[#allocation1] sm:$0x1]  }
   0xa   :  { %11 = vrot.lane.b32.xlu0 %v10_v1, %s36_s0  ;;  %23 = vrot.lane.b32.xlu1 %v22_v2, %s37_s8  ;;  %v16_v4 = vld [vmem:[#allocation1 + $0x2] sm:$0x1]   ;;  %8 = vst.msk [vmem:[#allocation0] sm:$0x1] %vm7_vm0, %v6_v3  }
   0xe   :  { %17 = vrot.lane.b32.xlu0 %v16_v4, %s38_s9 }
  0x7c   :  { %v12_v5 = vpop.permute.xlu0 %11   ;;  %v24_v6 = vpop.permute.xlu1 %23  }
  0x7d   :  { %14 = vst.msk [vmem:[#allocation0] sm:$0x1] %vm13_vm1, %v12_v5  }
  0x80   :  { %v18_v7 = vpop.permute.xlu0 %17  }
  0x81   :  { %20 = vst.msk [vmem:[#allocation0] sm:$0x1] %vm19_vm2, %v18_v7  }
  0x82   :  { %26 = vst.msk [vmem:[#allocation0] sm:$0x1] %vm25_vm3, %v24_v6  }
  0x89   :  { %v30_v8 = vld [vmem:[#allocation0] sm:$0x1] }
  0x8a   :  { %32 = vst [vmem:[%s56_s1] sm:$0x1] %v30_v8 }

// kernel: deep_ritz_block.1
= control target key start
LH: loop header
LB: loop body
LE: loop exit
PB: predicated region body
PF: predicated region fallthrough
CT: control target
= control target key end

     0   :  { %v543_v3 = vmov 0.0   ;;  %s870_s1 = inlined_call_operand.vmem [shape: f32[128,256], index: 1, kind: input, shape index: {}]   ;;  %s871_s3 = inlined_call_operand.vmem [shape: f32[256,128], index: 3, kind: input, shape index: {}]   ;;  %s872_s0 = inlined_call_operand.vmem [shape: f32[64,128], index: 0, kind: input, shape index: {}]   ;;  %s873_s2 = inlined_call_operand.vmem [shape: f32[1,256], index: 2, kind: input, shape index: {}]   ;;  %s874_s4 = inlined_call_operand.vmem [shape: f32[1,128], index: 4, kind: input, shape index: {}]   ;;  %s875_s5 = inlined_call_operand.vmem [shape: f32[64,128], index: 5, kind: output, shape index: {}]  }
   0x1   :  { %v29_v0 = vld [vmem:[%s870_s1 + $0x8] sm:$0xff]  ;;  %v31_v1 = vld [vmem:[%s870_s1 + $0x18] sm:$0xff]  ;;  %v28_v2 = vld [vmem:[%s870_s1] sm:$0xff]  ;;  %136 = vmatprep.mubr.f32.mxu0 %v543_v3 }
   0x2   :  { %v430_v4 = vpack.c.bf16 %v31_v1, %v29_v0  ;;  %v30_v5 = vld [vmem:[%s870_s1 + $0x10] sm:$0xff]  ;;  %v33_v6 = vld [vmem:[%s870_s1 + $0x28] sm:$0xff]  ;;  %v35_v7 = vld [vmem:[%s870_s1 + $0x38] sm:$0xff] }
   0x3   :  { %v432_v8 = vpack.c.bf16 %v30_v5, %v28_v2  ;;  %v434_v9 = vpack.c.bf16 %v35_v7, %v33_v6  ;;  %v32_v10 = vld [vmem:[%s870_s1 + $0x20] sm:$0xff]  ;;  %v34_v11 = vld [vmem:[%s870_s1 + $0x30] sm:$0xff]  ;;  %v37_v12 = vld [vmem:[%s870_s1 + $0x48] sm:$0xff] }
   0x4   :  { %431 = vmatprep.subr.bf16.mxu0 %v430_v4  ;;  %v39_v13 = vld [vmem:[%s870_s1 + $0x58] sm:$0xff]  ;;  %v436_v14 = vpack.c.bf16 %v34_v11, %v32_v10  ;;  %v36_v16 = vld [vmem:[%s870_s1 + $0x40] sm:$0xff]  ;;  %v38_v17 = vld [vmem:[%s870_s1 + $0x50] sm:$0xff] }
   0x5   :  { %433 = vmatpush1.bf16.msra.mxu0 %v432_v8  ;;  %v438_v15 = vpack.c.bf16 %v39_v13, %v37_v12  ;;  %v41_v18 = vld [vmem:[%s870_s1 + $0x68] sm:$0xff]  ;;  %v43_v19 = vld [vmem:[%s870_s1 + $0x78] sm:$0xff]  ;;  %v440_v20 = vpack.c.bf16 %v38_v17, %v36_v16  ;;  %v40_v22 = vld [vmem:[%s870_s1 + $0x60] sm:$0xff] }
   0x6   :  { %435 = vmatprep.subr.bf16.mxu0 %v434_v9  ;;  %v442_v21 = vpack.c.bf16 %v43_v19, %v41_v18  ;;  %v42_v23 = vld [vmem:[%s870_s1 + $0x70] sm:$0xff]  ;;  %v45_v24 = vld [vmem:[%s870_s1 + $0x88] sm:$0xff]  ;;  %v47_v25 = vld [vmem:[%s870_s1 + $0x98] sm:$0xff] }
   0x7   :  { %v444_v26 = vpack.c.bf16 %v42_v23, %v40_v22  ;;  %v44_v27 = vld [vmem:[%s870_s1 + $0x80] sm:$0xff]  ;;  %v46_v28 = vld [vmem:[%s870_s1 + $0x90] sm:$0xff]  ;;  %v49_v29 = vld [vmem:[%s870_s1 + $0xa8] sm:$0xff]  ;;  %v446_v30 = vpack.c.bf16 %v47_v25, %v45_v24 }
   0x8   :  { %v51_v31 = vld [vmem:[%s870_s1 + $0xb8] sm:$0xff]  ;;  %v217_v32 = vld [vmem:[%s871_s3 + $0x80] sm:$0xff]  ;;  %v218_v33 = vld [vmem:[%s871_s3 + $0x88] sm:$0xff]  ;;  %v448_v42 = vpack.c.bf16 %v46_v28, %v44_v27 }
   0x9   :  { %437 = vmatpush1.bf16.msra.mxu0 %v436_v14  ;;  %v462_v34 = vpack.c.bf16 %v218_v33, %v217_v32  ;;  %v201_v35 = vld [vmem:[%s871_s3] sm:$0xff]  ;;  %v202_v36 = vld [vmem:[%s871_s3 + $0x8] sm:$0xff]  ;;  %v219_v37 = vld [vmem:[%s871_s3 + $0x90] sm:$0xff]  ;;  %v450_v46 = vpack.c.bf16 %v51_v31, %v49_v29 }
   0xa   :  { %439 = vmatprep.subr.bf16.mxu0 %v438_v15  ;;  %v464_v38 = vpack.c.bf16 %v202_v36, %v201_v35  ;;  %v220_v39 = vld [vmem:[%s871_s3 + $0x98] sm:$0xff]  ;;  %v203_v40 = vld [vmem:[%s871_s3 + $0x10] sm:$0xff]  ;;  %v221_v44 = vld [vmem:[%s871_s3 + $0xa0] sm:$0xff] }
   0xb   :  { %v204_v41 = vld [vmem:[%s871_s3 + $0x18] sm:$0xff]  ;;  %463 = vmatprep.subr.bf16.mxu1 %v462_v34  ;;  %v466_v43 = vpack.c.bf16 %v220_v39, %v219_v37  ;;  %v222_v45 = vld [vmem:[%s871_s3 + $0xa8] sm:$0xff]  ;;  %v48_v47 = vld [vmem:[%s870_s1 + $0xa0] sm:$0xff] }
   0xc   :  { %v50_v48 = vld [vmem:[%s870_s1 + $0xb0] sm:$0xff]  ;;  %v53_v49 = vld [vmem:[%s870_s1 + $0xc8] sm:$0xff]  ;;  %465 = vmatpush3.bf16.msra.mxu1 %v464_v38  ;;  %v468_v50 = vpack.c.bf16 %v204_v41, %v203_v40  ;;  %v55_v51 = vld [vmem:[%s870_s1 + $0xd8] sm:$0xff]  ;;  %v470_v52 = vpack.c.bf16 %v222_v45, %v221_v44  ;;  %v62_v41 = vlaneseq }
   0xd   :  { %441 = vmatpush1.bf16.msra.mxu0 %v440_v20  ;;  %467 = vmatprep.subr.bf16.mxu1 %v466_v43  ;;  %v205_v53 = vld [vmem:[%s871_s3 + $0x20] sm:$0xff]  ;;  %v206_v54 = vld [vmem:[%s871_s3 + $0x28] sm:$0xff]  ;;  %v223_v55 = vld [vmem:[%s871_s3 + $0xb0] sm:$0xff]  ;;  %v452_v57 = vpack.c.bf16 %v50_v48, %v48_v47  ;;  %v454_v58 = vpack.c.bf16 %v55_v51, %v53_v49 }
   0xe   :  { %443 = vmatprep.subr.bf16.mxu0 %v442_v21  ;;  %v224_v56 = vld [vmem:[%s871_s3 + $0xb8] sm:$0xff]  ;;  %v52_v59 = vld [vmem:[%s870_s1 + $0xc0] sm:$0xff]  ;;  %v54_v60 = vld [vmem:[%s870_s1 + $0xd0] sm:$0xff]  ;;  %v472_v62 = vpack.c.bf16 %v206_v54, %v205_v53 }
   0xf   :  { %v57_v61 = vld [vmem:[%s870_s1 + $0xe8] sm:$0xff]  ;;  %v59_v63 = vld [vmem:[%s870_s1 + $0xf8] sm:$0xff]  ;;  %v474_v0 = vpack.c.bf16 %v224_v56, %v223_v55  ;;  %v207_v1 = vld [vmem:[%s871_s3 + $0x30] sm:$0xff]  ;;  %v456_v4 = vpack.c.bf16 %v54_v60, %v52_v59 }
  0x10   :  { %469 = vmatpush3.bf16.msra.mxu1 %v468_v50  ;;  %v208_v2 = vld [vmem:[%s871_s3 + $0x38] sm:$0xff]  ;;  %v458_v5 = vpack.c.bf16 %v59_v63, %v57_v61  ;;  %v56_v6 = vld [vmem:[%s870_s1 + $0xe0] sm:$0xff]  ;;  %v58_v7 = vld [vmem:[%s870_s1 + $0xf0] sm:$0xff] }
  0x11   :  { %445 = vmatpush1.bf16.msra.mxu0 %v444_v26  ;;  %471 = vmatprep.subr.bf16.mxu1 %v470_v52  ;;  %v476_v8 = vpack.c.bf16 %v208_v2, %v207_v1  ;;  %v460_v9 = vpack.c.bf16 %v58_v7, %v56_v6  ;;  %v722_v10 = vld [vmem:[%s872_s0] sm:$0xff]  ;;  %v729_v11 = vld [vmem:[%s872_s0 + $0x8] sm:$0xff]  ;;  %v736_v12 = vld [vmem:[%s872_s0 + $0x10] sm:$0xff] }
  0x12   :  { %447 = vmatprep.subr.bf16.mxu0 %v446_v30  ;;  %v743_v13 = vld [vmem:[%s872_s0 + $0x18] sm:$0xff]  ;;  %v750_v14 = vld [vmem:[%s872_s0 + $0x20] sm:$0xff]  ;;  %v757_v15 = vld [vmem:[%s872_s0 + $0x28] sm:$0xff] }
  0x13   :  { %v764_v16 = vld [vmem:[%s872_s0 + $0x30] sm:$0xff]  ;;  %v771_v17 = vld [vmem:[%s872_s0 + $0x38] sm:$0xff]  ;;  %v225_v18 = vld [vmem:[%s871_s3 + $0xc0] sm:$0xff] }
  0x14   :  { %473 = vmatpush3.bf16.msra.mxu1 %v472_v62  ;;  %v226_v19 = vld [vmem:[%s871_s3 + $0xc8] sm:$0xff]  ;;  %v227_v23 = vld [vmem:[%s871_s3 + $0xd0] sm:$0xff]  ;;  %v228_v24 = vld [vmem:[%s871_s3 + $0xd8] sm:$0xff] }
  0x15   :  { %449 = vmatpush1.bf16.msra.mxu0 %v448_v42  ;;  %475 = vmatprep.subr.bf16.mxu1 %v474_v0  ;;  %v478_v20 = vpack.c.bf16 %v226_v19, %v225_v18  ;;  %v210_v21 = vld [vmem:[%s871_s3 + $0x48] sm:$0xff]  ;;  %v482_v25 = vpack.c.bf16 %v228_v24, %v227_v23  ;;  %v211_v26 = vld [vmem:[%s871_s3 + $0x50] sm:$0xff]  ;;  %v212_v27 = vld [vmem:[%s871_s3 + $0x58] sm:$0xff]  ;;  %v63_v42 = vshrl.u32 %v62_v41, 7 }
  0x16   :  { %451 = vmatprep.subr.bf16.mxu0 %v450_v46  ;;  %v484_v28 = vpack.c.bf16 %v212_v27, %v211_v26  ;;  %v229_v29 = vld [vmem:[%s871_s3 + $0xe0] sm:$0xff]  ;;  %v230_v30 = vld [vmem:[%s871_s3 + $0xe8] sm:$0xff]  ;;  %v231_v35 = vld [vmem:[%s871_s3 + $0xf0] sm:$0xff] }
  0x17   :  { %v486_v31 = vpack.c.bf16 %v230_v30, %v229_v29  ;;  %v213_v32 = vld [vmem:[%s871_s3 + $0x60] sm:$0xff]  ;;  %v214_v33 = vld [vmem:[%s871_s3 + $0x68] sm:$0xff]  ;;  %v232_v36 = vld [vmem:[%s871_s3 + $0xf8] sm:$0xff]  ;;  %v64_v43 = vsub.s32 0, %v63_v42  ;;  %v68_v45 = vsub.s32 1, %v63_v42 }
  0x18   :  { %477 = vmatpush3.bf16.msra.mxu1 %v476_v8  ;;  %v488_v34 = vpack.c.bf16 %v214_v33, %v213_v32  ;;  %v490_v37 = vpack.c.bf16 %v232_v36, %v231_v35  ;;  %v215_v38 = vld [vmem:[%s871_s3 + $0x70] sm:$0xff]  ;;  %v216_v39 = vld [vmem:[%s871_s3 + $0x78] sm:$0xff]  ;;  %v60_v44 = vld [vmem:[%s873_s2] sm:$0x3] }
  0x19   :  { %453 = vmatpush1.bf16.msra.mxu0 %v452_v57  ;;  %479 = vmatprep.subr.bf16.mxu1 %v478_v20  ;;  %v492_v40 = vpack.c.bf16 %v216_v39, %v215_v38  ;;  %v65_v46 = vrot.slane %v60_v44, %v64_v43  ;;  %v825_v47 = vrot.slane %v60_v44, %v68_v45  ;;  %v373_v41 = vld [vmem:[%s874_s4] ss:$0 sm:$0xff] }
  0x1a   :  { %455 = vmatprep.subr.bf16.mxu0 %v454_v58 }
  0x1d   :  { %457 = vmatpush1.bf16.msra.mxu0 %v456_v4 }
  0x1e   :  { %459 = vmatprep.subr.bf16.mxu0 %v458_v5 }
  0x21   :  { %461 = vmatpush1.bf16.msra.mxu0 %v460_v9 }
  0x24   :  { %137 = vmatmul.mubr.f32.vlgmr.msra.gmra.mrb[0].mxu0 %v722_v10 }
  0x25   :  { %142 = vmatprep.mubr.f32.mxu0 %v543_v3 }
  0x28   :  { %143 = vmatmul.mubr.f32.gmra.mrb[2].mxu0 %v729_v11 }
  0x29   :  { %148 = vmatprep.mubr.f32.mxu0 %v543_v3 }
  0x2c   :  { %149 = vmatmul.mubr.f32.gmra.mrb[4].mxu0 %v736_v12 }
  0x2d   :  { %154 = vmatprep.mubr.f32.mxu0 %v543_v3 }
  0x30   :  { %155 = vmatmul.mubr.f32.gmra.mrb[6].mxu0 %v743_v13 }
  0x31   :  { %160 = vmatprep.mubr.f32.mxu0 %v543_v3 }
  0x34   :  { %161 = vmatmul.mubr.f32.gmra.mrb[8].mxu0 %v750_v14 }
  0x35   :  { %166 = vmatprep.mubr.f32.mxu0 %v543_v3 }
  0x38   :  { %167 = vmatmul.mubr.f32.gmra.mrb[10].mxu0 %v757_v15 }
  0x39   :  { %172 = vmatprep.mubr.f32.mxu0 %v543_v3 }
  0x3c   :  { %173 = vmatmul.mubr.f32.gmra.mrb[12].mxu0 %v764_v16 }
  0x3d   :  { %178 = vmatprep.mubr.f32.mxu0 %v543_v3  ;;  %v209_v3 = vld [vmem:[%s871_s3 + $0x40] sm:$0xff] }
  0x3e   :  { %v480_v22 = vpack.c.bf16 %v210_v21, %v209_v3 }
  0x40   :  { %179 = vmatmul.mubr.f32.gmra.mrb[14].mxu0 %v771_v17  ;;  %481 = vmatpush3.bf16.msra.mxu1 %v480_v22 }
  0x41   :  { %483 = vmatprep.subr.bf16.mxu1 %v482_v25 }
  0x44   :  { %485 = vmatpush3.bf16.msra.mxu1 %v484_v28 }
  0x45   :  { %487 = vmatprep.subr.bf16.mxu1 %v486_v31 }
  0x48   :  { %489 = vmatpush3.bf16.msra.mxu1 %v488_v34 }
  0x49   :  { %491 = vmatprep.subr.bf16.mxu1 %v490_v37 }
  0x4c   :  { %493 = vmatpush3.bf16.msra.mxu1 %v492_v40 }
  0xf7   :  { %v138_v48 = vpop.f32.mrb[0].mxu0 }
  0xf8   :  { %v139_v49 = vadd.f32 %v138_v48, %v65_v46  ;;  %v140_v50 = vpop.f32.mrb[1].mxu0 }
  0xf9   :  { %v141_v51 = vadd.f32 %v140_v50, %v825_v47 }
  0xfb   :  { %495 = vtanh.f32 %v141_v51  ;;  %v144_v52 = vpop.f32.mrb[2].mxu0 }
  0xfc   :  { %497 = vtanh.f32 %v139_v49  ;;  %v145_v53 = vadd.f32 %v144_v52, %v65_v46  ;;  %v146_v54 = vpop.f32.mrb[3].mxu0 }
  0xfd   :  { %v147_v55 = vadd.f32 %v146_v54, %v825_v47 }
  0xff   :  { %499 = vtanh.f32 %v147_v55  ;;  %v150_v56 = vpop.f32.mrb[4].mxu0 }
 0x100   :  { %501 = vtanh.f32 %v145_v53  ;;  %v151_v57 = vadd.f32 %v150_v56, %v65_v46  ;;  %v152_v58 = vpop.f32.mrb[5].mxu0 }
 0x101   :  { %v153_v59 = vadd.f32 %v152_v58, %v825_v47 }
 0x103   :  { %503 = vtanh.f32 %v153_v59  ;;  %v156_v60 = vpop.f32.mrb[6].mxu0 }
 0x104   :  { %505 = vtanh.f32 %v151_v57  ;;  %v157_v61 = vadd.f32 %v156_v60, %v65_v46  ;;  %v158_v62 = vpop.f32.mrb[7].mxu0 }
 0x105   :  { %v496_v63 = vpop.eup %495  ;;  %v159_v0 = vadd.f32 %v158_v62, %v825_v47 }
 0x106   :  { %v498_v1 = vpop.eup %497  ;;  %304 = vmatprep.mubr.f32.mxu1 %v496_v63 }
 0x107   :  { %507 = vtanh.f32 %v159_v0  ;;  %v162_v2 = vpop.f32.mrb[8].mxu0  ;;  %305 = vmatmul.mubr.f32.vlgmr.msra.gmra.mrb[0].mxu1 %v498_v1 }
 0x108   :  { %509 = vtanh.f32 %v157_v61  ;;  %v163_v4 = vadd.f32 %v162_v2, %v65_v46  ;;  %v164_v5 = vpop.f32.mrb[9].mxu0 }
 0x109   :  { %v500_v6 = vpop.eup %499  ;;  %v165_v7 = vadd.f32 %v164_v5, %v825_v47 }
 0x10a   :  { %v502_v8 = vpop.eup %501  ;;  %309 = vmatprep.mubr.f32.mxu1 %v500_v6 }
 0x10b   :  { %511 = vtanh.f32 %v165_v7  ;;  %v168_v9 = vpop.f32.mrb[10].mxu0  ;;  %310 = vmatmul.mubr.f32.gmra.mrb[2].mxu1 %v502_v8 }
 0x10c   :  { %513 = vtanh.f32 %v163_v4  ;;  %v169_v18 = vadd.f32 %v168_v9, %v65_v46  ;;  %v170_v19 = vpop.f32.mrb[11].mxu0 }
 0x10d   :  { %v504_v20 = vpop.eup %503  ;;  %v171_v3 = vadd.f32 %v170_v19, %v825_v47 }
 0x10e   :  { %v506_v21 = vpop.eup %505  ;;  %314 = vmatprep.mubr.f32.mxu1 %v504_v20 }
 0x10f   :  { %515 = vtanh.f32 %v171_v3  ;;  %v174_v22 = vpop.f32.mrb[12].mxu0  ;;  %315 = vmatmul.mubr.f32.gmra.mrb[4].mxu1 %v506_v21 }
 0x110   :  { %517 = vtanh.f32 %v169_v18  ;;  %v175_v23 = vadd.f32 %v174_v22, %v65_v46  ;;  %v176_v24 = vpop.f32.mrb[13].mxu0 }
 0x111   :  { %v508_v25 = vpop.eup %507  ;;  %v177_v26 = vadd.f32 %v176_v24, %v825_v47 }
 0x112   :  { %v510_v27 = vpop.eup %509  ;;  %319 = vmatprep.mubr.f32.mxu1 %v508_v25 }
 0x113   :  { %519 = vtanh.f32 %v177_v26  ;;  %v180_v28 = vpop.f32.mrb[14].mxu0  ;;  %320 = vmatmul.mubr.f32.gmra.mrb[6].mxu1 %v510_v27 }
 0x114   :  { %521 = vtanh.f32 %v175_v23  ;;  %v181_v29 = vadd.f32 %v180_v28, %v65_v46  ;;  %v182_v30 = vpop.f32.mrb[15].mxu0 }
 0x115   :  { %v512_v31 = vpop.eup %511  ;;  %v183_v32 = vadd.f32 %v182_v30, %v825_v47 }
 0x116   :  { %v514_v33 = vpop.eup %513  ;;  %324 = vmatprep.mubr.f32.mxu1 %v512_v31 }
 0x117   :  { %523 = vtanh.f32 %v183_v32  ;;  %325 = vmatmul.mubr.f32.gmra.mrb[8].mxu1 %v514_v33 }
 0x118   :  { %525 = vtanh.f32 %v181_v29 }
 0x119   :  { %v516_v34 = vpop.eup %515 }
 0x11a   :  { %v518_v35 = vpop.eup %517  ;;  %329 = vmatprep.mubr.f32.mxu1 %v516_v34 }
 0x11b   :  { %330 = vmatmul.mubr.f32.gmra.mrb[10].mxu1 %v518_v35 }
 0x11d   :  { %v520_v36 = vpop.eup %519 }
 0x11e   :  { %v522_v37 = vpop.eup %521  ;;  %334 = vmatprep.mubr.f32.mxu1 %v520_v36 }
 0x11f   :  { %335 = vmatmul.mubr.f32.gmra.mrb[12].mxu1 %v522_v37 }
 0x121   :  { %v524_v38 = vpop.eup %523 }
 0x122   :  { %v526_v39 = vpop.eup %525  ;;  %339 = vmatprep.mubr.f32.mxu1 %v524_v38 }
 0x123   :  { %340 = vmatmul.mubr.f32.gmra.mrb[14].mxu1 %v526_v39 }
 0x1da   :  { %v406_v40 = vpop.f32.mrb[0].mxu1 }
 0x1db   :  { %v407_v42 = vpop.f32.mrb[1].mxu1 }
 0x1dc   :  { %v408_v43 = vadd.f32 %v407_v42, %v406_v40 }
 0x1de   :  { %v307_v44 = vadd.f32 %v408_v43, %v373_v41  ;;  %v409_v45 = vpop.f32.mrb[2].mxu1 }
 0x1df   :  { %v410_v46 = vpop.f32.mrb[3].mxu1 }
 0x1e0   :  { %527 = vtanh.f32 %v307_v44  ;;  %v411_v47 = vadd.f32 %v410_v46, %v409_v45 }
 0x1e2   :  { %v312_v48 = vadd.f32 %v411_v47, %v373_v41  ;;  %v412_v49 = vpop.f32.mrb[4].mxu1 }
 0x1e3   :  { %v413_v50 = vpop.f32.mrb[5].mxu1 }
 0x1e4   :  { %529 = vtanh.f32 %v312_v48  ;;  %v414_v51 = vadd.f32 %v413_v50, %v412_v49 }
 0x1e6   :  { %v317_v52 = vadd.f32 %v414_v51, %v373_v41  ;;  %v415_v53 = vpop.f32.mrb[6].mxu1 }
 0x1e7   :  { %v416_v54 = vpop.f32.mrb[7].mxu1 }
 0x1e8   :  { %531 = vtanh.f32 %v317_v52  ;;  %v417_v55 = vadd.f32 %v416_v54, %v415_v53 }
 0x1ea   :  { %v528_v56 = vpop.eup %527  ;;  %v322_v57 = vadd.f32 %v417_v55, %v373_v41  ;;  %v418_v58 = vpop.f32.mrb[8].mxu1 }
 0x1eb   :  { %v353_v59 = vadd.f32 %v528_v56, %v722_v10  ;;  %v419_v60 = vpop.f32.mrb[9].mxu1 }
 0x1ec   :  { %533 = vtanh.f32 %v322_v57  ;;  %v420_v61 = vadd.f32 %v419_v60, %v418_v58 }
 0x1ed   :  { %361 = vst [vmem:[%s875_s5] sm:$0xff] %v353_v59 }
 0x1ee   :  { %v530_v62 = vpop.eup %529  ;;  %v327_v63 = vadd.f32 %v420_v61, %v373_v41  ;;  %v421_v0 = vpop.f32.mrb[10].mxu1 }
 0x1ef   :  { %v354_v1 = vadd.f32 %v530_v62, %v729_v11  ;;  %v422_v2 = vpop.f32.mrb[11].mxu1 }
 0x1f0   :  { %535 = vtanh.f32 %v327_v63  ;;  %v423_v4 = vadd.f32 %v422_v2, %v421_v0 }
 0x1f1   :  { %362 = vst [vmem:[%s875_s5 + $0x8] sm:$0xff] %v354_v1 }
 0x1f2   :  { %v532_v10 = vpop.eup %531  ;;  %v332_v5 = vadd.f32 %v423_v4, %v373_v41  ;;  %v424_v6 = vpop.f32.mrb[12].mxu1 }
 0x1f3   :  { %v355_v7 = vadd.f32 %v532_v10, %v736_v12  ;;  %v425_v8 = vpop.f32.mrb[13].mxu1 }
 0x1f4   :  { %537 = vtanh.f32 %v332_v5  ;;  %v426_v9 = vadd.f32 %v425_v8, %v424_v6 }
 0x1f5   :  { %363 = vst [vmem:[%s875_s5 + $0x10] sm:$0xff] %v355_v7 }
 0x1f6   :  { %v534_v11 = vpop.eup %533  ;;  %v337_v18 = vadd.f32 %v426_v9, %v373_v41  ;;  %v427_v19 = vpop.f32.mrb[14].mxu1 }
 0x1f7   :  { %v356_v20 = vadd.f32 %v534_v11, %v743_v13  ;;  %v428_v3 = vpop.f32.mrb[15].mxu1 }
 0x1f8   :  { %539 = vtanh.f32 %v337_v18  ;;  %v429_v21 = vadd.f32 %v428_v3, %v427_v19 }
 0x1f9   :  { %364 = vst [vmem:[%s875_s5 + $0x18] sm:$0xff] %v356_v20 }
 0x1fa   :  { %v536_v12 = vpop.eup %535  ;;  %v342_v22 = vadd.f32 %v429_v21, %v373_v41 }
 0x1fb   :  { %v357_v23 = vadd.f32 %v536_v12, %v750_v14 }
 0x1fc   :  { %541 = vtanh.f32 %v342_v22 }
 0x1fd   :  { %365 = vst [vmem:[%s875_s5 + $0x20] sm:$0xff] %v357_v23 }
 0x1fe   :  { %v538_v24 = vpop.eup %537 }
 0x1ff   :  { %v358_v25 = vadd.f32 %v538_v24, %v757_v15 }
 0x201   :  { %366 = vst [vmem:[%s875_s5 + $0x28] sm:$0xff] %v358_v25 }
 0x202   :  { %v540_v13 = vpop.eup %539 }
 0x203   :  { %v359_v26 = vadd.f32 %v540_v13, %v764_v16 }
 0x205   :  { %367 = vst [vmem:[%s875_s5 + $0x30] sm:$0xff] %v359_v26 }
 0x206   :  { %v542_v14 = vpop.eup %541 }
 0x207   :  { %v360_v27 = vadd.f32 %v542_v14, %v771_v17 }
 0x209   :  { %368 = vst [vmem:[%s875_s5 + $0x38] sm:$0xff] %v360_v27 }

</bundles_post_ra>
